<compile_context>
chip_gen: v5e
topology: v5e:2x2
jax: 0.10.0
libtpu: 0.0.40
codegen_flags: <defaults>
</compile_context>

<pallas_src>
import math

import jax
import jax.numpy as jnp
from jax.experimental import pallas as pl
from jax.experimental.pallas import tpu as pltpu

_LANES = 128
_MAX_COLS = 1024      # wide lane-dense slab (feedback: 1024-8192 lanes)
_TILE_ROWS = 512      # multiple of 32 -> safe for all dtype packings.
                      # (512, 1024) f32 tile = 2 MiB/buffer; in+out double
                      # buffered = 8 MiB total, within v5e's 16 MiB scoped
                      # VMEM default and far under v7x's 64 MiB physical VMEM.


def _copy_kernel(x_ref, o_ref):
    # Identity copy of the current tile (VMEM -> VMEM); DMA in/out is
    # software-pipelined across grid steps by Pallas.
    o_ref[...] = x_ref[...]


def _pallas_copy_flat(flat):
    """Identity copy of a flat array via a tiled, pipelined Pallas kernel."""
    n = flat.size
    main_n = (n // _LANES) * _LANES
    if main_n == 0:
        # Tiny tensor (< 128 elements): not worth a kernel launch.
        return flat

    # Widest lane-multiple column count that divides the aligned prefix.
    cols = _LANES
    c = _MAX_COLS
    while c >= _LANES:
        if main_n % c == 0:
            cols = c
            break
        c //= 2
    rows = main_n // cols
    tile_rows = min(rows, _TILE_ROWS)   # full-extent block if rows < 512

    x2d = flat[:main_n].reshape(rows, cols)
    grid = (pl.cdiv(rows, tile_rows),)

    y2d = pl.pallas_call(
        _copy_kernel,
        out_shape=jax.ShapeDtypeStruct((rows, cols), flat.dtype),
        grid=grid,
        in_specs=[pl.BlockSpec((tile_rows, cols), lambda i: (i, 0))],
        out_specs=pl.BlockSpec((tile_rows, cols), lambda i: (i, 0)),
        compiler_params=pltpu.CompilerParams(
            dimension_semantics=("parallel",)),
    )(x2d)

    y_flat = y2d.reshape(-1)
    if main_n != n:
        # Sub-128-element tail: plain JAX, no pad / full-array slice copies.
        y_flat = jnp.concatenate([y_flat, flat[main_n:]])
    return y_flat


def _resolve_shape(shape, n):
    shape = list(shape)
    if -1 in shape:
        idx = shape.index(-1)
        known = math.prod(s for s in shape if s != -1)
        assert known > 0 and n % known == 0, "view size not compatible"
        shape[idx] = n // known
    assert math.prod(shape) == n, "view size not compatible with input size"
    return tuple(shape)


def reshape_forward(x, shape, *, copy=False):
    """Equivalent of torch.Tensor.view(shape).

    Default path is metadata-only (zero HBM traffic), matching torch .view on
    a contiguous tensor.  copy=True forces a physical copy streamed through
    the tiled Pallas identity kernel.
    """
    shape = _resolve_shape(shape, x.size)
    if not copy:
        return x.reshape(shape)           # bitcast; no data movement
    return _pallas_copy_flat(x.reshape(-1)).reshape(shape)


if __name__ == "__main__":
    key = jax.random.PRNGKey(0)
    # Small NCHW-like input, consistent with a VAE encoder/decoder reshape.
    x = jax.random.normal(key, (2, 4, 16, 16), dtype=jnp.float32)
    target_shape = (2, 4 * 16 * 16)
    ref = x.reshape(target_shape)

    # Default path: metadata-only reshape (mirrors torch .view, no copy).
    y0 = jax.block_until_ready(reshape_forward(x, target_shape))
    assert y0.shape == ref.shape and y0.dtype == ref.dtype
    assert bool(jnp.array_equal(y0, ref))

    # Pallas copy path (exercises the tiled identity kernel).
    y1 = jax.block_until_ready(reshape_forward(x, target_shape, copy=True))
    assert y1.shape == ref.shape and y1.dtype == ref.dtype
    assert bool(jnp.array_equal(y1, ref))

    # -1 dim handling, like torch's view(-1, D).
    y2 = jax.block_until_ready(reshape_forward(x, (-1, 16 * 16), copy=True))
    assert y2.shape == (8, 256)
    assert bool(jnp.array_equal(y2, x.reshape(8, 256)))

    # Larger input: multi-block grid (rows=2048, tile=512 -> 4 parallel steps).
    xb = jax.random.normal(jax.random.PRNGKey(1), (8, 64, 64, 64),
                           dtype=jnp.float32)
    yb = jax.block_until_ready(reshape_forward(xb, (8, -1), copy=True))
    assert bool(jnp.array_equal(yb, xb.reshape(8, -1)))

    print("KERNEL_OK")
</pallas_src>

<mosaic_0001>
module attributes {stable_mosaic.version = 11 : i64} {
  func.func @_copy_kernel(%arg0: i32, %arg1: memref<2x1024xf32, #tpu.memory_space<vmem>>, %arg2: memref<2x1024xf32, #tpu.memory_space<vmem>>) attributes {dimension_semantics = [#tpu.dimension_semantics<parallel>], iteration_bounds = array<i64: 1>, scalar_prefetch = 0 : i64, scratch_operands = 0 : i64, tpu.core_type = #tpu.core_type<tc>, window_params = [{transform_indices = @transform_0, window_bounds = array<i64: 2, 1024>}, {transform_indices = @transform_1, window_bounds = array<i64: 2, 1024>}]} {
    %c0 = arith.constant 0 : index
    %c0_0 = arith.constant 0 : index
    %0 = vector.load %arg1[%c0, %c0_0] : memref<2x1024xf32, #tpu.memory_space<vmem>>, vector<2x1024xf32>
    %c0_1 = arith.constant 0 : index
    %c0_2 = arith.constant 0 : index
    %1 = vector.load %arg2[%c0_1, %c0_2] : memref<2x1024xf32, #tpu.memory_space<vmem>>, vector<2x1024xf32>
    tpu.vector_store %arg2[%c0_1, %c0_2], %0 {strides = array<i32>} : memref<2x1024xf32, #tpu.memory_space<vmem>>, vector<2x1024xf32>,
    return
  }
  func.func @transform_0(%arg0: i32) -> (i32, i32) {
    %c0_i32 = arith.constant 0 : i32
    %c0_i32_0 = arith.constant 0 : i32
    return %arg0, %c0_i32 : i32, i32
  }
  func.func @transform_1(%arg0: i32) -> (i32, i32) {
    %c0_i32 = arith.constant 0 : i32
    %c0_i32_0 = arith.constant 0 : i32
    return %arg0, %c0_i32 : i32, i32
  }
}

</mosaic_0001>

<bundles_post_ra>
// kernel: tpu_custom_call.1
= control target key start
LH: loop header
LB: loop body
LE: loop exit
PB: predicated region body
PF: predicated region fallthrough
CT: control target
= control target key end

     0   :  { %6 = vsyncpa [#allocation3], 0  ;;  %s116_s0 = inlined_call_operand.hbm [shape: f32[2,1024], index: 0, kind: input, shape index: {}]   ;;  %s117_s1 = inlined_call_operand.hbm [shape: f32[2,1024], index: 1, kind: output, shape index: {}]  }
   0x1   :  { %7 = vsyncpa [#allocation4], 0  ;;  %s13_s8 = sshll.u32 %s116_s0, 4  ;;  %s98_s9 = smov [#allocation2]   ;;  %s14_s8 = int_to_ptr.hbm [resolvable:$true] %s13_s8 }
   0x2   :  { %s15_s10 = sshll.u32 %s98_s9, 4  ;;  %s16_s10 = int_to_ptr.vmem [resolvable:$true] %s15_s10 }
   0x3   :  { %18 = dma.hbm_to_vmem [thread:$0]  %s14_s8, 256, %s16_s10, [#allocation3]  }
   0x4   :  { %94 = dma.done.wait [#allocation3], 256  }
   0x5   :  { %95 = vsyncadd [#allocation3], 4294967040  ;;  %s99_s11 = smov [#allocation5]   ;;  %s34_s15 = sshll.u32 %s117_s1, 4  ;;  %v23_v0 = vld [vmem:[#allocation2] sm:$0xff]  ;;  %v24_v1 = vld [vmem:[#allocation2 + $0x8] sm:$0xff]  ;;  %s35_s15 = int_to_ptr.hbm [resolvable:$true] %s34_s15 }
   0x6   :  { %s32_s12 = sshll.u32 %s99_s11, 4  ;;  %25 = vst [vmem:[#allocation5] sm:$0xff] %v23_v0  ;;  %s33_s12 = int_to_ptr.vmem [resolvable:$true] %s32_s12 }
   0x7   :  { %26 = vst [vmem:[#allocation5 + $0x8] sm:$0xff] %v24_v1 }
   0x8   :  { %37 = dma.vmem_to_hbm [thread:$0]  %s33_s12, 256, %s35_s15, [#allocation4]  }
   0x9   :  { %96 = dma.done.wait [#allocation4], 256  }
   0xa   :  { %97 = vsyncadd [#allocation4], 4294967040 }
   0xb   :  { %42 = vsyncpa [#allocation3], 1 }
   0xc   :  { %43 = vsyncpa [#allocation4], 1 }

</bundles_post_ra>
